<compile_context>
chip_gen: v7x
topology: tpu7x:2x2x1
jax: 0.10.0
libtpu: 0.0.40
codegen_flags: <defaults>
</compile_context>

<pallas_src>
import functools

import jax
import jax.numpy as jnp
from jax.experimental import pallas as pl
from jax.experimental.pallas import tpu as pltpu


def ce_kernel(y_pred_ref, labels_ref, out_ref, *, n_total):
    # y_pred_ref: (TILE_N, C) probabilities in VMEM (block of the full (N, C))
    # labels_ref: (TILE_N, 1) int32 class indices in VMEM
    # out_ref:    (1, 1, 128) f32 — this block's partial sum of log(p_target),
    #             broadcast across the 128 lanes (lane-dense store)
    i = pl.program_id(0)

    y_pred = y_pred_ref[...]                       # (TILE_N, C)
    labels = labels_ref[...]                       # (TILE_N, 1) int32
    tn, c = y_pred.shape

    # Pick the target-class probability per row: lane-iota compare + lane-sum.
    # Select before the log -> only TILE_N transcendentals, no 0*log(0) NaN.
    # The sum is exact in the input dtype (zeros + one value per row); only
    # the (TILE_N, 1) picked vector is cast to f32.
    col_ids = jax.lax.broadcasted_iota(jnp.int32, (tn, c), dimension=1)
    sel = jnp.where(col_ids == labels, y_pred, jnp.zeros((), y_pred.dtype))
    picked = jnp.sum(sel, axis=-1, keepdims=True).astype(jnp.float32)

    # Mask rows past the true batch size (padded remainder block): replace
    # with 1.0 so they contribute log(1) = 0 to the partial sum.
    row_ids = i * tn + jax.lax.broadcasted_iota(jnp.int32, (tn, 1), dimension=0)
    picked = jnp.where(row_ids < n_total, picked, jnp.float32(1.0))

    partial = jnp.sum(jnp.log(picked))             # scalar, f32
    out_ref[...] = jnp.broadcast_to(partial, out_ref.shape)


def _pick_tile_n(n, c, itemsize, target_block_bytes=12 * 1024 * 1024):
    """Largest dtype-aligned row tile whose *padded* VMEM footprint per buffer
    (y_pred block with class dim rounded up to 128 lanes + the lane-padded
    (tile_n, 1) int32 labels strip) stays at <= ~target_block_bytes."""
    c_pad = pl.cdiv(c, 128) * 128
    row_bytes = c_pad * itemsize + 128 * 4         # y_pred row + labels row
    rows = max(8, target_block_bytes // row_bytes)
    if rows >= n:
        return n                                   # single full-dim block
    mult = {4: 8, 2: 16, 1: 32}.get(itemsize, 8)   # sublane packing minimum
    return max(mult, (rows // mult) * mult)


def ce_loss(y_pred, y_gt, tile_n=None):
    """y_pred: (N, C) probabilities; y_gt: (N,) int class indices."""
    n, c = y_pred.shape
    itemsize = jnp.dtype(y_pred.dtype).itemsize
    labels = y_gt.astype(jnp.int32).reshape(n, 1)

    if tile_n is None:
        tile_n = _pick_tile_n(n, c, itemsize)
    grid_n = pl.cdiv(n, tile_n)

    # Explicit scoped-VMEM budget from the lane-padded footprint
    # (double-buffered inputs + tiny output blocks + margin).
    c_pad = pl.cdiv(c, 128) * 128
    block_bytes = tile_n * (c_pad * itemsize + 128 * 4)
    vmem_limit = max(2 * block_bytes + (4 << 20), 16 << 20)

    kernel = functools.partial(ce_kernel, n_total=n)

    cost = pl.CostEstimate(
        flops=3 * n * c,                    # compare + select + add per elem
        transcendentals=n,                  # one log per row
        bytes_accessed=n * c * itemsize + n * 4 + grid_n * 128 * 4,
    )

    partials = pl.pallas_call(
        kernel,
        out_shape=jax.ShapeDtypeStruct((grid_n, 1, 128), jnp.float32),
        grid_spec=pltpu.PrefetchScalarGridSpec(
            num_scalar_prefetch=0,
            grid=(grid_n,),
            in_specs=[
                pl.BlockSpec((tile_n, c), lambda i: (i, 0)),
                pl.BlockSpec((tile_n, 1), lambda i: (i, 0)),
            ],
            out_specs=pl.BlockSpec((1, 1, 128), lambda i: (i, 0, 0)),
        ),
        compiler_params=pltpu.CompilerParams(
            dimension_semantics=("parallel",),
            vmem_limit_bytes=vmem_limit,
        ),
        cost_estimate=cost,
    )(y_pred, labels)

    # Finish the tiny (grid_n,) reduction outside the kernel.
    return -jnp.sum(partials[:, 0, 0]) * (1.0 / float(n * c))


def _reference(y_pred, y_gt):
    n, c = y_pred.shape
    onehot = jax.nn.one_hot(y_gt, c, dtype=jnp.float32)
    return (-(jnp.sum(onehot * jnp.log(y_pred), axis=0) / n)).sum() / c


if __name__ == "__main__":
    key = jax.random.PRNGKey(0)

    # Small shapes consistent with the module: (N, C) probabilities + labels.
    k1, k2 = jax.random.split(key)
    N, C = 8, 32
    y_pred = jax.nn.softmax(jax.random.normal(k1, (N, C), jnp.float32), -1)
    y_gt = jax.random.randint(k2, (N,), 0, C, dtype=jnp.int32)

    loss = jax.block_until_ready(ce_loss(y_pred, y_gt))
    ref = _reference(y_pred, y_gt)
    assert jnp.allclose(loss, ref, rtol=1e-5, atol=1e-6), (loss, ref)

    # Second check exercising the multi-block parallel grid, per-block partial
    # outputs, and remainder-row masking (528 not a multiple of 64).
    k3, k4 = jax.random.split(k2)
    N2, C2 = 528, 128
    y_pred2 = jax.nn.softmax(jax.random.normal(k3, (N2, C2), jnp.float32), -1)
    y_gt2 = jax.random.randint(k4, (N2,), 0, C2, dtype=jnp.int32)

    loss2 = jax.block_until_ready(ce_loss(y_pred2, y_gt2, tile_n=64))
    ref2 = _reference(y_pred2, y_gt2)
    assert jnp.allclose(loss2, ref2, rtol=1e-5, atol=1e-6), (loss2, ref2)

    print("KERNEL_OK")
</pallas_src>

<mosaic_0001>
module attributes {stable_mosaic.version = 11 : i64} {
  func.func @ce_kernel(%arg0: i32, %arg1: memref<8x32xf32, #tpu.memory_space<vmem>>, %arg2: memref<8x1xi32, #tpu.memory_space<vmem>>, %arg3: memref<1x1x128xf32, #tpu.memory_space<vmem>>) attributes {dimension_semantics = [#tpu.dimension_semantics<parallel>], iteration_bounds = array<i64: 1>, scalar_prefetch = 0 : i64, scratch_operands = 0 : i64, tpu.core_type = #tpu.core_type<tc>, window_params = [{transform_indices = @transform_0, window_bounds = array<i64: 8, 32>}, {transform_indices = @transform_1, window_bounds = array<i64: 8, 1>}, {transform_indices = @transform_2, window_bounds = array<i64: 1, 1, 128>}]} {
    %c0 = arith.constant 0 : index
    %c0_0 = arith.constant 0 : index
    %0 = vector.load %arg1[%c0, %c0_0] : memref<8x32xf32, #tpu.memory_space<vmem>>, vector<8x32xf32>
    %c0_1 = arith.constant 0 : index
    %c0_2 = arith.constant 0 : index
    %1 = vector.load %arg2[%c0_1, %c0_2] : memref<8x1xi32, #tpu.memory_space<vmem>>, vector<8x1xi32>
    %2 = tpu.iota {dimensions = array<i32: 1>} : vector<8x32xi32>
    %3 = vector.broadcast %1 : vector<8x1xi32> to vector<8x32xi32>
    %4 = arith.cmpi eq, %2, %3 : vector<8x32xi32>
    %cst = arith.constant 0.000000e+00 : f32
    %5 = vector.broadcast %cst : f32 to vector<8x32xf32>
    %6 = arith.select %4, %0, %5 : vector<8x32xi1>, vector<8x32xf32>
    %cst_3 = arith.constant dense<0.000000e+00> : vector<8xf32>
    %7 = vector.multi_reduction <add>, %6, %cst_3 [1] : vector<8x32xf32> to vector<8xf32>
    %8 = vector.shape_cast %7 : vector<8xf32> to vector<8x1xf32>
    %c8_i32 = arith.constant 8 : i32
    %9 = arith.muli %arg0, %c8_i32 : i32
    %10 = tpu.iota {dimensions = array<i32: 0>} : vector<8x1xi32>
    %11 = vector.broadcast %9 : i32 to vector<8x1xi32>
    %12 = arith.addi %11, %10 : vector<8x1xi32>
    %c8_i32_4 = arith.constant 8 : i32
    %13 = vector.broadcast %c8_i32_4 : i32 to vector<8x1xi32>
    %14 = arith.cmpi slt, %12, %13 : vector<8x1xi32>
    %cst_5 = arith.constant 1.000000e+00 : f32
    %15 = vector.broadcast %cst_5 : f32 to vector<8x1xf32>
    %16 = arith.select %14, %8, %15 : vector<8x1xi1>, vector<8x1xf32>
    %17 = math.log %16 : vector<8x1xf32>
    %18 = vector.shape_cast %17 : vector<8x1xf32> to vector<1x8x1xf32>
    %cst_6 = arith.constant dense<0.000000e+00> : vector<1xf32>
    %19 = vector.multi_reduction <add>, %18, %cst_6 [1, 2] : vector<1x8x1xf32> to vector<1xf32>
    %20 = vector.shape_cast %19 : vector<1xf32> to vector<1x1x1xf32>
    %21 = vector.extract %20[0, 0, 0] : f32 from vector<1x1x1xf32>
    %22 = vector.broadcast %21 : f32 to vector<1x1x128xf32>
    %c0_7 = arith.constant 0 : index
    %c0_8 = arith.constant 0 : index
    %c0_9 = arith.constant 0 : index
    %23 = vector.load %arg3[%c0_7, %c0_8, %c0_9] : memref<1x1x128xf32, #tpu.memory_space<vmem>>, vector<1x1x128xf32>
    tpu.vector_store %arg3[%c0_7, %c0_8, %c0_9], %22 {strides = array<i32>} : memref<1x1x128xf32, #tpu.memory_space<vmem>>, vector<1x1x128xf32>,
    return
  }
  func.func @transform_0(%arg0: i32) -> (i32, i32) {
    %c0_i32 = arith.constant 0 : i32
    %c0_i32_0 = arith.constant 0 : i32
    return %arg0, %c0_i32 : i32, i32
  }
  func.func @transform_1(%arg0: i32) -> (i32, i32) {
    %c0_i32 = arith.constant 0 : i32
    %c0_i32_0 = arith.constant 0 : i32
    return %arg0, %c0_i32 : i32, i32
  }
  func.func @transform_2(%arg0: i32) -> (i32, i32, i32) {
    %c0_i32 = arith.constant 0 : i32
    %c0_i32_0 = arith.constant 0 : i32
    %c0_i32_1 = arith.constant 0 : i32
    return %arg0, %c0_i32, %c0_i32_0 : i32, i32, i32
  }
}

</mosaic_0001>

<bundles_post_ra>
// kernel: tpu_custom_call.1
= control target key start
LH: loop header
LB: loop body
LE: loop exit
PB: predicated region body
PF: predicated region fallthrough
CT: control target
= control target key end

     0   :  { %s127_s0 = inlined_call_operand.vmem [shape: f32[8,32], index: 0, kind: input, shape index: {}]   ;;  %s128_s1 = inlined_call_operand.vmem [shape: s32[8,1], index: 1, kind: input, shape index: {}]   ;;  %s129_s2 = inlined_call_operand.hbm [shape: f32[1,1,128], index: 2, kind: output, shape index: {}]  }
   0x1   :  { %v13_v0 = vld [vmem:[%s128_s1] sm:$0xff] }
   0x2   :  { %7 = vsyncpa [#allocation3], 0  ;;  %v92_v1 = vmov 0   ;;  %v14_v2 = vlaneseq  ;;  %v12_v4 = vld [vmem:[%s127_s0] sm:$0xff]  ;;  %vm21_vm0 = vcmask 261120   ;;  %vm34_vm2 = vcmask 7168  }
   0x3   :  { %65 = vset.pattern.permute.xlu0 %v92_v1  ;;  %s93_s0 = smov [#allocation2]  }
   0x4   :  { %17 = vperm.xlu0 %65, %v13_v0   ;;  %v15_v3 = vand.u32 127, %v14_v2  ;;  %s53_s1 = sshll.u32 %s93_s0, 4  ;;  %s54_s1 = int_to_ptr.vmem [resolvable:$true] %s53_s1 }
   0x5   :  { %s68_s14 = scalar_lea.vmem %s54_s1, 16  ;;  %s72_s15 = scalar_lea.vmem %s54_s1, 32 }
   0x6   :  { %p69_p0 = scmp.ne.s32.totalorder %s54_s1, %s68_s14  ;;  %p73_p1 = scmp.lt.s32.totalorder %s54_s1, %s54_s1 }
   0x7   :  { %p74_p2 = scmp.lt.s32.totalorder %s72_s15, %s68_s14 }
   0x9   :  { %p75_p3 = por %p74_p2, %p73_p1 }
   0xb   :  { %p76_p4 = pnand %p75_p3, %p69_p0 }
  0x83   :  { %v18_v5 = vpop.permute.xlu0 %17 }
  0x84   :  { %vm19_vm1 = vcmp.eq.s32.totalorder %v15_v3, %v18_v5 }
  0x85   :  { %v20_v6 = vsel %vm19_vm1, %v12_v4, 0.0 }
  0x86   :  { %v22_v7 = vsel %vm21_vm0, %v20_v6, 0.0 }
  0x87   :  { %23 = vadd.xlane.f32.xlu0 %v22_v7 }
 0x114   :  { %v24_v8 = vpop.xlane.xlu0 %23 }
 0x115   :  { %66 = vlog2.f32 %v24_v8 }
 0x11f   :  { %v67_v9 = vpop.eup %66 }
 0x120   :  { %v33_v10 = vmul.f32 0.6931472, %v67_v9 }
 0x122   :  { %v35_v11 = vsel %vm34_vm2, %v33_v10, 0.0 }
 0x123   :  { %36 = vadd.xlane.f32.xlu1 %v35_v11 }
 0x1b0   :  { %v37_v12 = vpop.xlane.xlu1 %36 }
 0x1b1   :  { %v38_v13 = vrot.slane %v37_v12, 4 }
 0x1b3   :  { %v39_v14 = vadd.f32 %v38_v13, %v37_v12 }
 0x1b5   :  { %v40_v15 = vrot.slane %v39_v14, 2 }
 0x1b7   :  { %v41_v16 = vadd.f32 %v40_v15, %v39_v14 }
 0x1b9   :  { %v42_v17 = vrot.slane %v41_v16, 1 }
 0x1bb   :  { %v43_v18 = vadd.f32 %v42_v17, %v41_v16 }
 0x1bd   :  { %61 = vpush %v43_v18 }
 0x1ee   :  { %s62_s13 = spop %61 }
 0x1ef   :  { %v45_v19 = vstv %s62_s13 }
 0x1f0   :  { %46 = vst [vmem:[#allocation2] sm:$0x1] %v45_v19 }
 0x1f1   :  { %79 = shalt.err (!%p76_p4)
}
 0x1f2   :  { %s80_s18 = scalar_lea.hbm %s129_s2, 16 }
 0x1f3   :  { %p81_p5 = scmp.ne.s32.totalorder %s129_s2, %s80_s18  ;;  %p84_p6 = scmp.lt.u32.totalorder %s80_s18, %s129_s2 }
 0x1f5   :  { %p86_p7 = pnand %p84_p6, %p81_p5 }
 0x1f7   :  { %89 = shalt.err (!%p86_p7)
}
 0x1f8   :  { %56 = dma.vmem_to_hbm [thread:$0]  %s54_s1, 16, %s129_s2, [#allocation3]  }
 0x1f9   :  { %90 = dma.done.wait [#allocation3], 16  }
 0x1fa   :  { %91 = vsyncadd [#allocation3], 4294967280 }
 0x1fb   :  { %60 = vsyncpa [#allocation3], 1 }

</bundles_post_ra>
